<compile_context>
chip_gen: v7x
topology: tpu7x:2x2x1
jax: 0.10.0
libtpu: 0.0.40
codegen_flags: <defaults>
</compile_context>

<pallas_src>
import jax
import jax.numpy as jnp
import numpy as np
from jax.experimental import pallas as pl
from jax.experimental.pallas import tpu as pltpu


def _round_up(x: int, m: int) -> int:
    return pl.cdiv(x, m) * m


def _vmem_capacity_bytes() -> int:
    """Physical VMEM of the local TPU generation (conservative fallback)."""
    try:
        info = pltpu.get_tpu_info()
        cap = getattr(info, "vmem_capacity_bytes", None)
        if cap:
            return int(cap)
    except Exception:
        pass
    return 64 * 1024 * 1024          # v7x per-TC size: safe everywhere


def _interp_weights(t_in: int, t_out: int, t_in_pad: int, t_out_pad: int,
                    dtype=jnp.float32) -> jnp.ndarray:
    """Dense (t_in_pad, t_out_pad) matrix reproducing F.interpolate(
    mode='linear', align_corners=False): out[..., j] = sum_i W[i, j]*x[..., i].
    Rows >= t_in and columns >= t_out are zero (tiling padding only)."""
    scale = t_in / t_out
    j = np.arange(t_out)
    src = np.maximum(scale * (j + 0.5) - 0.5, 0.0)       # PyTorch clamps to 0
    i0 = np.minimum(np.floor(src).astype(np.int64), t_in - 1)
    i1 = np.minimum(i0 + 1, t_in - 1)                    # clamp at right edge
    lam1 = src - i0
    lam0 = 1.0 - lam1
    w = np.zeros((t_in_pad, t_out_pad), dtype=np.float64)
    np.add.at(w, (i0, j), lam0)
    np.add.at(w, (i1, j), lam1)
    return jnp.asarray(w, dtype=dtype)


def _interp_kernel(x_ref, w_ref, o_ref):
    # (TM, T) @ (T, newT_pad) on the MXU, f32 accumulation, lane-dense store.
    o_ref[...] = jnp.dot(
        x_ref[...], w_ref[...], preferred_element_type=jnp.float32
    ).astype(o_ref.dtype)


def _interp_kernel_ktiled(x_ref, w_ref, o_ref, acc_ref):
    # Same matmul, time axis tiled: accumulate in f32 scratch (pattern P3).
    k = pl.program_id(1)

    @pl.when(k == 0)
    def _():
        acc_ref[...] = jnp.zeros_like(acc_ref)

    acc_ref[...] += jnp.dot(x_ref[...], w_ref[...],
                            preferred_element_type=jnp.float32)

    @pl.when(k == pl.num_programs(1) - 1)
    def _():
        o_ref[...] = acc_ref[...].astype(o_ref.dtype)


def _choose_tiling(rows, T, newt_pad, itemsize, out_itemsize, sub, tm_cap, budget):
    """Pick (tm, n_tiles, rows_pad, tk, n_k, t_pad) under a VMEM budget."""

    def tm_fit(tk, n_k):
        # Conservative: x / W / out double-buffered, + f32 acc if K-tiled.
        w_buf = 2 * tk * newt_pad * itemsize
        per_row = (2 * tk * itemsize
                   + 2 * newt_pad * out_itemsize
                   + (newt_pad * 4 if n_k > 1 else 0))
        return (budget - w_buf) // per_row

    # >=2 row tiles whenever possible so both v7x TensorCores get work.
    min_tiles = 2 if rows >= 2 * sub else 1
    tm_want = min(tm_cap, _round_up(pl.cdiv(rows, min_tiles), sub))
    need = min(tm_want, 256)

    # First try: no K tiling (full T in one block).
    tk, n_k, t_pad = T, 1, T
    fit = tm_fit(T, 1)
    if fit < need:
        # Long window: tile the time axis so tm stays in the sweet spot.
        tk = 512
        while tk > 128 and tm_fit(tk, pl.cdiv(T, tk)) < need:
            tk //= 2
        tk = min(tk, _round_up(T, 128))
        n_k = pl.cdiv(T, tk)
        t_pad = n_k * tk
        fit = tm_fit(tk, n_k)

    tm_max = max(sub, min(tm_cap, (fit // sub) * sub))
    n_tiles = max(min_tiles, pl.cdiv(rows, tm_max))
    tm = _round_up(pl.cdiv(rows, n_tiles), sub)       # balanced, minimal pad
    rows_pad = n_tiles * tm
    return tm, n_tiles, rows_pad, tk, n_k, t_pad


def preprocess_layer(emg, acc, gyro, euler, quat,
                     emg_rate: int = 500, target_rate: int = 100,
                     row_tile: int = 512, vmem_budget_bytes=None):
    """JAX/Pallas equivalent of PreprocessLayer.forward (use_wavelet=False).

    Inputs:  emg (B,T,8), acc (B,T,3), gyro (B,T,3), euler (B,T,3), quat (B,T,4)
    Returns: (B, 21, new_T) with new_T = int(T * target_rate / emg_rate)
    """
    B, T, _ = emg.shape
    for a in (acc, gyro, euler, quat):
        assert a.shape[0] == B and a.shape[1] == T, (
            "all sensor streams must share (B, T); ragged-time _align not implemented")
    new_t = int(T * target_rate / emg_rate)
    if new_t < 1:
        raise ValueError(f"T={T} too short for {emg_rate}->{target_rate} Hz resampling")

    # Channel order matches torch.cat((emg, acc, gyro, euler, quat), dim=1).
    x = jnp.concatenate([emg, acc, gyro, euler, quat], axis=-1)   # (B, T, 21)
    C = x.shape[-1]
    assert C == 21, f"expected 21 channels, got {C}"
    rows = B * C

    itemsize = jnp.dtype(x.dtype).itemsize
    out_itemsize = itemsize
    sub = max(8, 32 // itemsize)           # sublane multiple: 8 (f32) / 16 (bf16)
    newt_pad = _round_up(new_t, 128)       # lane-dense (unmasked) output stores

    vmem_cap = _vmem_capacity_bytes()
    budget = int(vmem_budget_bytes) if vmem_budget_bytes else int(vmem_cap * 0.4)
    tm_cap = max(sub, (row_tile // sub) * sub)

    tm, n_tiles, rows_pad, tk, n_k, t_pad = _choose_tiling(
        rows, T, newt_pad, itemsize, out_itemsize, sub, tm_cap, budget)

    # One channels-first transpose + (at most) one fused zero-pad.
    x2d = jnp.transpose(x, (0, 2, 1)).reshape(rows, T)            # (B*21, T)
    if rows_pad != rows or t_pad != T:
        x2d = jnp.pad(x2d, ((0, rows_pad - rows), (0, t_pad - T)))

    w = _interp_weights(T, new_t, t_pad, newt_pad, dtype=x.dtype)  # (T_pad, newT_pad)

    # Explicit scoped-VMEM limit sized to the actual blocks + headroom.
    used = ((2 * tm * tk + 2 * tk * newt_pad + 2 * tm * newt_pad) * itemsize
            + (tm * newt_pad * 4 if n_k > 1 else 0))
    vmem_limit = int(min(max(used + (8 << 20), 16 << 20), int(vmem_cap * 0.9)))

    cost = pl.CostEstimate(
        flops=2 * rows * T * new_t,
        transcendentals=0,
        bytes_accessed=(rows_pad * t_pad + t_pad * newt_pad
                        + rows_pad * newt_pad) * itemsize)

    out_shape = jax.ShapeDtypeStruct((rows_pad, newt_pad), x.dtype)

    if n_k == 1:
        grid = (n_tiles,)
        x_spec = pl.BlockSpec((tm, t_pad), lambda i: (i, 0))
        o_spec = pl.BlockSpec((tm, newt_pad), lambda i: (i, 0))
        cp = pltpu.CompilerParams(dimension_semantics=("parallel",),
                                  vmem_limit_bytes=vmem_limit)

        def _run(w_spec):
            return pl.pallas_call(
                _interp_kernel, out_shape=out_shape, grid=grid,
                in_specs=[x_spec, w_spec], out_specs=o_spec,
                compiler_params=cp, cost_estimate=cost)(x2d, w)

        try:
            # W is grid-invariant: single-buffer it to reclaim one VMEM copy.
            out2d = _run(pl.BlockSpec((t_pad, newt_pad), lambda i: (0, 0),
                                      pipeline_mode=pl.Buffered(buffer_count=1)))
        except Exception:
            # Fallback: default (double-buffered) resident W.
            out2d = _run(pl.BlockSpec((t_pad, newt_pad), lambda i: (0, 0)))
    else:
        grid = (n_tiles, n_k)              # reduction (time) axis last
        out2d = pl.pallas_call(
            _interp_kernel_ktiled, out_shape=out_shape, grid=grid,
            in_specs=[pl.BlockSpec((tm, tk), lambda i, k: (i, k)),
                      pl.BlockSpec((tk, newt_pad), lambda i, k: (k, 0))],
            out_specs=pl.BlockSpec((tm, newt_pad), lambda i, k: (i, 0)),
            scratch_shapes=[pltpu.VMEM((tm, newt_pad), jnp.float32)],
            compiler_params=pltpu.CompilerParams(
                dimension_semantics=("parallel", "arbitrary"),
                vmem_limit_bytes=vmem_limit),
            cost_estimate=cost)(x2d, w)

    if rows_pad != rows or newt_pad != new_t:
        out2d = out2d[:rows, :new_t]
    return out2d.reshape(B, C, new_t)


def _reference(emg, acc, gyro, euler, quat, emg_rate=500, target_rate=100):
    """Pure-JAX reference (gather form of linear interp, align_corners=False)."""
    B, T, _ = emg.shape
    new_t = int(T * target_rate / emg_rate)
    x = jnp.concatenate(
        [jnp.transpose(a, (0, 2, 1)) for a in (emg, acc, gyro, euler, quat)],
        axis=1,
    )
    scale = T / new_t
    j = np.arange(new_t)
    src = np.maximum(scale * (j + 0.5) - 0.5, 0.0)
    i0 = np.minimum(np.floor(src).astype(np.int32), T - 1)
    i1 = np.minimum(i0 + 1, T - 1)
    lam1 = jnp.asarray(src - i0, dtype=x.dtype)
    lam0 = 1.0 - lam1
    return x[..., i0] * lam0 + x[..., i1] * lam1


if __name__ == "__main__":
    def _make_inputs(key, B, T):
        ks = jax.random.split(key, 5)
        return (jax.random.normal(ks[0], (B, T, 8), dtype=jnp.float32),
                jax.random.normal(ks[1], (B, T, 3), dtype=jnp.float32),
                jax.random.normal(ks[2], (B, T, 3), dtype=jnp.float32),
                jax.random.normal(ks[3], (B, T, 3), dtype=jnp.float32),
                jax.random.normal(ks[4], (B, T, 4), dtype=jnp.float32))

    key = jax.random.PRNGKey(0)
    k1, k2, k3, k4 = jax.random.split(key, 4)

    # Case 1: tiny shape (balanced 2x24 row tiles): B=2, T=40 -> new_T=8.
    B, T = 2, 40
    ins = _make_inputs(k1, B, T)
    out = jax.block_until_ready(preprocess_layer(*ins))
    assert out.shape == (B, 21, int(T * 100 / 500)), out.shape
    ref = jax.block_until_ready(_reference(*ins))
    np.testing.assert_allclose(np.asarray(out), np.asarray(ref), rtol=1e-5, atol=1e-5)

    # Case 2: larger shape, balanced multi-step grid (rows=630 -> 2x320 tiles):
    # B=30, T=500 -> new_T=100.
    B, T = 30, 500
    ins = _make_inputs(k2, B, T)
    out = jax.block_until_ready(preprocess_layer(*ins))
    assert out.shape == (B, 21, int(T * 100 / 500)), out.shape
    ref = jax.block_until_ready(_reference(*ins))
    np.testing.assert_allclose(np.asarray(out), np.asarray(ref), rtol=1e-5, atol=1e-5)

    # Case 3: non-integer resample ratio (fractional interp weights).
    B, T = 2, 40
    ins = _make_inputs(k3, B, T)
    out = jax.block_until_ready(preprocess_layer(*ins, emg_rate=500, target_rate=150))
    assert out.shape == (B, 21, int(T * 150 / 500)), out.shape
    ref = jax.block_until_ready(_reference(*ins, emg_rate=500, target_rate=150))
    np.testing.assert_allclose(np.asarray(out), np.asarray(ref), rtol=1e-5, atol=1e-5)

    # Case 4: artificially small VMEM budget forces the K-tiled accumulator
    # path (grid=(row_tiles, k_tiles) + f32 scratch), validating long-window
    # behavior without needing a huge T.
    B, T = 4, 500
    ins = _make_inputs(k4, B, T)
    out = jax.block_until_ready(
        preprocess_layer(*ins, vmem_budget_bytes=256 * 1024))
    assert out.shape == (B, 21, int(T * 100 / 500)), out.shape
    ref = jax.block_until_ready(_reference(*ins))
    np.testing.assert_allclose(np.asarray(out), np.asarray(ref), rtol=1e-5, atol=1e-5)

    print("KERNEL_OK")
</pallas_src>

<mosaic_0001>
module attributes {stable_mosaic.version = 11 : i64} {
  func.func @_interp_kernel(%arg0: i32, %arg1: memref<24x40xf32, #tpu.memory_space<vmem>>, %arg2: memref<40x128xf32, #tpu.memory_space<vmem>>, %arg3: memref<24x128xf32, #tpu.memory_space<vmem>>) attributes {dimension_semantics = [#tpu.dimension_semantics<parallel>], iteration_bounds = array<i64: 2>, scalar_prefetch = 0 : i64, scratch_operands = 0 : i64, tpu.core_type = #tpu.core_type<tc>, window_params = [{transform_indices = @transform_0, window_bounds = array<i64: 24, 40>}, {pipeline_mode = #tpu.pipeline_mode<synchronous>, transform_indices = @transform_1, window_bounds = array<i64: 40, 128>}, {transform_indices = @transform_2, window_bounds = array<i64: 24, 128>}]} {
    %c0 = arith.constant 0 : index
    %c0_0 = arith.constant 0 : index
    %0 = vector.load %arg1[%c0, %c0_0] : memref<24x40xf32, #tpu.memory_space<vmem>>, vector<24x40xf32>
    %c0_1 = arith.constant 0 : index
    %c0_2 = arith.constant 0 : index
    %1 = vector.load %arg2[%c0_1, %c0_2] : memref<40x128xf32, #tpu.memory_space<vmem>>, vector<40x128xf32>
    %cst = arith.constant dense<0.000000e+00> : vector<24x128xf32>
    %2 = tpu.matmul %0, %1, %cst {dimension_numbers = #tpu.dot_dimension_numbers<[1], [0], [0], [1], [0, 0, 1, 1], [], []>} : vector<24x40xf32>, vector<40x128xf32>, vector<24x128xf32> -> vector<24x128xf32>
    %c0_3 = arith.constant 0 : index
    %c0_4 = arith.constant 0 : index
    %3 = vector.load %arg3[%c0_3, %c0_4] : memref<24x128xf32, #tpu.memory_space<vmem>>, vector<24x128xf32>
    tpu.vector_store %arg3[%c0_3, %c0_4], %2 {strides = array<i32>} : memref<24x128xf32, #tpu.memory_space<vmem>>, vector<24x128xf32>,
    return
  }
  func.func @transform_0(%arg0: i32) -> (i32, i32) {
    %c0_i32 = arith.constant 0 : i32
    %c0_i32_0 = arith.constant 0 : i32
    return %arg0, %c0_i32 : i32, i32
  }
  func.func @transform_1(%arg0: i32) -> (i32, i32) {
    %c0_i32 = arith.constant 0 : i32
    %c0_i32_0 = arith.constant 0 : i32
    %c0_i32_1 = arith.constant 0 : i32
    return %c0_i32, %c0_i32_0 : i32, i32
  }
  func.func @transform_2(%arg0: i32) -> (i32, i32) {
    %c0_i32 = arith.constant 0 : i32
    %c0_i32_0 = arith.constant 0 : i32
    return %arg0, %c0_i32 : i32, i32
  }
}

module attributes {stable_mosaic.version = 11 : i64} {
  func.func @_interp_kernel(%arg0: i32, %arg1: memref<24x40xf32, #tpu.memory_space<vmem>>, %arg2: memref<40x128xf32, #tpu.memory_space<vmem>>, %arg3: memref<24x128xf32, #tpu.memory_space<vmem>>) attributes {dimension_semantics = [#tpu.dimension_semantics<parallel>], iteration_bounds = array<i64: 2>, scalar_prefetch = 0 : i64, scratch_operands = 0 : i64, tpu.core_type = #tpu.core_type<tc>, window_params = [{transform_indices = @transform_0, window_bounds = array<i64: 24, 40>}, {pipeline_mode = #tpu.pipeline_mode<synchronous>, transform_indices = @transform_1, window_bounds = array<i64: 40, 128>}, {transform_indices = @transform_2, window_bounds = array<i64: 24, 128>}]} {
    %c0 = arith.constant 0 : index
    %c0_0 = arith.constant 0 : index
    %0 = vector.load %arg1[%c0, %c0_0] : memref<24x40xf32, #tpu.memory_space<vmem>>, vector<24x40xf32>
    %c0_1 = arith.constant 0 : index
    %c0_2 = arith.constant 0 : index
    %1 = vector.load %arg2[%c0_1, %c0_2] : memref<40x128xf32, #tpu.memory_space<vmem>>, vector<40x128xf32>
    %cst = arith.constant dense<0.000000e+00> : vector<24x128xf32>
    %2 = tpu.matmul %0, %1, %cst {dimension_numbers = #tpu.dot_dimension_numbers<[1], [0], [0], [1], [0, 0, 1, 1], [], []>} : vector<24x40xf32>, vector<40x128xf32>, vector<24x128xf32> -> vector<24x128xf32>
    %c0_3 = arith.constant 0 : index
    %c0_4 = arith.constant 0 : index
    %3 = vector.load %arg3[%c0_3, %c0_4] : memref<24x128xf32, #tpu.memory_space<vmem>>, vector<24x128xf32>
    tpu.vector_store %arg3[%c0_3, %c0_4], %2 {strides = array<i32>} : memref<24x128xf32, #tpu.memory_space<vmem>>, vector<24x128xf32>,
    return
  }
  func.func @transform_0(%arg0: i32) -> (i32, i32) {
    %c0_i32 = arith.constant 0 : i32
    %c0_i32_0 = arith.constant 0 : i32
    return %arg0, %c0_i32 : i32, i32
  }
  func.func @transform_1(%arg0: i32) -> (i32, i32) {
    %c0_i32 = arith.constant 0 : i32
    %c0_i32_0 = arith.constant 0 : i32
    %c0_i32_1 = arith.constant 0 : i32
    return %c0_i32, %c0_i32_0 : i32, i32
  }
  func.func @transform_2(%arg0: i32) -> (i32, i32) {
    %c0_i32 = arith.constant 0 : i32
    %c0_i32_0 = arith.constant 0 : i32
    return %arg0, %c0_i32 : i32, i32
  }
}

</mosaic_0001>

<bundles_post_ra>
// kernel: tpu_custom_call.1
= control target key start
LH: loop header
LB: loop body
LE: loop exit
PB: predicated region body
PF: predicated region fallthrough
CT: control target
= control target key end

     0   :  { %7 = vsyncpa [#allocation3], 0  ;;  %s623_s0 = inlined_call_operand.vmem [shape: f32[48,40], index: 0, kind: input, shape index: {}]   ;;  %s624_s1 = inlined_call_operand.vmem [shape: f32[40,128], index: 1, kind: input, shape index: {}]   ;;  %s625_s2 = inlined_call_operand.hbm [shape: f32[48,128], index: 2, kind: output, shape index: {}]  }
   0x1   :  { %9 = vsyncpa [#allocation3 + $0x1], 0  ;;  %s503_s9 = smov 0   ;;  %s505_s10 = smov 0  }
   0x2   :  { %s507_s11 = smov 0   ;;  %s509_s12 = smov 0  }
   0x3 LB: > { %s524_s13 = sadd.s32 4294967295, %s480_s12   ;;  %s322_s14 = sadd.s32 4294967294, %s480_s12   ;;  %s480_s12 = sphi %s509_s12, %s631_s12   ;;  %s476_s11 = sphi %s507_s11, %s630_s11   ;;  %s472_s10 = sphi %s505_s10, %s629_s10   ;;  %s468_s9 = sphi %s503_s9, %s628_s9  }
   0x4   : > { %s528_s15 = sadd.s32 1, %s480_s12   ;;  %s69_s16 = sadd.s32 1, %s476_s11 }
   0x5   : > { %s66_s17 = ssub.s32 %s480_s12, %s528_s15  ;;  %p79_p0 = scmp.ne.s32.totalorder %s476_s11, %s472_s10 }
   0x6   : > { %p67_p1 = scmp.eq.s32.totalorder %s66_s17, 0  ;;  %p80_p2 = scmp.eq.s32.totalorder %s524_s13, 1 }
   0x7   : > { %p85_p3 = scmp.ne.s32.totalorder %s472_s10, %s468_s9  ;;  %p86_p4 = scmp.eq.s32.totalorder %s322_s14, 1 }
   0x8   : > { %s539_s18 = scalar_select %p67_p1, %s476_s11, %s69_s16  }
   0x9   : > { %p541_p5 = por %p80_p2, %p79_p0  ;;  %p545_p6 = por %p86_p4, %p85_p3 }
   0xa   : > { %p325_p7 = scmp.ge.s32.totalorder %s480_s12, 1  ;;  %p116_p8 = scmp.lt.s32.totalorder %s480_s12, 3 }
   0xc   : > { %p117_p9 = pnand %p325_p7, %p116_p8 }
   0xd   : > { %v148_v0 = vld [vmem:[%s624_s1] sm:$0xff] (!%p117_p9)  ;;  %v149_v1 = vld [vmem:[%s624_s1 + $0x8] sm:$0xff] (!%p117_p9)  ;;  %v150_v2 = vld [vmem:[%s624_s1 + $0x10] sm:$0xff] (!%p117_p9)  ;;  %v482_v3 = vmov (!%p117_p9), 0.0|0.0   ;;  %s138_s29 = smul.u32 (!%p117_p9), 3, %s524_s13  ;;  %vm483_vm0 = vmmov (!%p117_p9), 0  }
   0xe   : > { %120 = sbr.rel (%p117_p9) target bundleno = 256 (0x100), region = 28  ;;  %367 = vmatprep.subr.bf16.mxu1 (!%p117_p9), %v482_v3  ;;  %v362_v4 = vpack.c.bf16 (!%p117_p9), %v149_v1, %v148_v0  ;;  %361 = vmatprep.subr.bf16.mxu0 (!%p117_p9), %v482_v3  ;;  %v151_v5 = vld [vmem:[%s624_s1 + $0x18] sm:$0xff] (!%p117_p9)  ;;  %v484_v6 = vmov (!%p117_p9), 0.0   ;;  %v152_v8 = vld [vmem:[%s624_s1 + $0x20] sm:$0xff] (!%p117_p9)  ;;  %vm153_vm1 = vcmask (!%p117_p9), 326656   ;;  %s135_s8 = sand.u32 (!%p117_p9), 1, %s472_s10  }
   0xf   : > { %355 = vmatprep.mubr.msk.f32.mxu1 (!%p117_p9), %vm483_vm0, %v484_v6  ;;  %352 = vmatprep.mubr.msk.f32.mxu0 (!%p117_p9), %vm483_vm0, %v484_v6  ;;  %v365_v7 = vpack.c.bf16 (!%p117_p9), %v151_v5, %v150_v2  ;;  %p139_p10 = scmp.lt.s32.totalorder (!%p117_p9), %s138_s29, 5  ;;  %s373_s14 = smul.u32 (!%p117_p9), 24, %s135_s8 }
  0x10   : > { %370 = vmatpush3.bf16.msra.mxu1 (!%p117_p9), %v362_v4  ;;  %363 = vmatpush3.bf16.msra.mxu0 (!%p117_p9), %v362_v4  ;;  %s333_s16 = smul.u32 (!%p117_p9), 384, %s524_s13  ;;  %s582_s13 = scalar_lea.sflag (!%p117_p9), [#allocation3], %s135_s8 }
  0x11   : > { %368 = vmatprep.subr.bf16.mxu1 (!%p117_p9), %v482_v3  ;;  %364 = vmatprep.subr.bf16.mxu0 (!%p117_p9), %v482_v3  ;;  %s137_s17 = scalar_lea.vmem (!%p117_p9), [#allocation2], %s373_s14  ;;  %s485_s26 = smov (!%p117_p9), [#allocation2]  }
  0x12   : > { %s260_s21 = sshll.u32 (!%p117_p9), %s137_s17, 4  ;;  %s580_s24 = scalar_lea.hbm (!%p117_p9), %s625_s2, %s333_s16  ;;  %s575_s21 = int_to_ptr.vmem [resolvable:$true] %s260_s21 }
  0x13   : > { %s418_s25 = scalar_lea.vmem (!%p117_p9), %s575_s21, 384  ;;  %s422_s27 = sshll.u32 (!%p117_p9), %s485_s26, 4  ;;  %s423_s27 = int_to_ptr.vmem [resolvable:$false] %s422_s27 }
  0x14   : > { %371 = vmatpush3.bf16.msra.mxu1 (!%p117_p9), %v365_v7  ;;  %366 = vmatpush3.bf16.msra.mxu0 (!%p117_p9), %v365_v7  ;;  %p419_p11 = scmp.ne.s32.totalorder (!%p117_p9), %s575_s21, %s418_s25  ;;  %s424_s28 = scalar_lea.vmem (!%p117_p9), %s423_s27, 768 }
  0x15   : > { %s633_s29 = smov (!%p139_p10, %s138_s29), 5  ;;  %369 = vmatprep.subr.mxu1 %v484_v6  ;;  %350 = vmatprep.subr.mxu0 %v484_v6  ;;  %p425_p0 = scmp.lt.s32.totalorder %s575_s21, %s423_s27 }
  0x16   : > { %s326_s30 = sshll.u32 %s633_s29, 3  ;;  %p420_p12 = pnand %p419_p11, %p541_p5 }
  0x17   : > { %s142_s7 = scalar_lea.vmem %s623_s0, %s326_s30  ;;  %p426_p1 = scmp.lt.s32.totalorder %s424_s28, %s418_s25 }
  0x18   : > { %v146_v9 = vld [vmem:[%s142_s7 + $0x8] sm:$0xff]  ;;  %v145_v10 = vld [vmem:[%s142_s7] sm:$0xff]  ;;  %372 = vmatpush3.msra.mxu1 %v152_v8  ;;  %351 = vmatpush3.msra.mxu0 %v152_v8  ;;  %v147_v11 = vld [vmem:[%s142_s7 + $0x10] sm:$0xff]  ;;  %p421_p13 = pneg %p420_p12 }
  0x19   : > { %356 = vmatmul.mubr.msk.f32.vlgmr.msra.gmra.mrb[0].mxu1 %vm153_vm1, %v146_v9  ;;  %353 = vmatmul.mubr.msk.f32.vlgmr.msra.gmra.mrb[0].mxu0 %vm153_vm1, %v145_v10  ;;  %p427_p2 = por %p426_p1, %p425_p0 }
  0x1a   : > { %358 = vmatprep.mubr.msk.f32.mxu1 %vm483_vm0, %v484_v6 }
  0x1b   : > { %p428_p3 = pnand %p427_p2, %p421_p13 }
  0x1d   : > { %359 = vmatmul.mubr.msk.f32.gmra.mrb[2].mxu1 %vm153_vm1, %v147_v11 }
  0xec   : > { %v234_v12 = vpop.f32.mrb[0].mxu1  ;;  %v229_v13 = vpop.f32.mrb[0].mxu0 }
  0xed   : > { %244 = vst [vmem:[%s137_s17 + $0x8] sm:$0xff] %v234_v12  ;;  %v357_v14 = vpop.f32.mrb[1].mxu1  ;;  %243 = vst [vmem:[%s137_s17] sm:$0xff] %v229_v13  ;;  %v354_v15 = vpop.f32.mrb[1].mxu0 }
  0xf0   : > { %v239_v16 = vpop.f32.mrb[2].mxu1 }
  0xf1   : > { %245 = vst [vmem:[%s137_s17 + $0x10] sm:$0xff] %v239_v16  ;;  %v360_v17 = vpop.f32.mrb[3].mxu1 }
  0xf2   : > { %431 = shalt.err (!%p428_p3)
}
  0xf3   : > { %s432_s29 = scalar_lea.hbm %s580_s24, 384  ;;  %s436_s4 = scalar_lea.hbm %s625_s2, 768 }
  0xf4   : > { %p433_p4 = scmp.ne.s32.totalorder %s580_s24, %s432_s29  ;;  %p437_p9 = scmp.lt.u32.totalorder %s580_s24, %s625_s2 }
  0xf5   : > { %p438_p10 = scmp.lt.u32.totalorder %s436_s4, %s432_s29  ;;  %p440_p12 = scmp.lt.u32.totalorder %s432_s29, %s580_s24 }
  0xf6   : > { %p434_p7 = pnand %p433_p4, %p541_p5 }
  0xf7   : > { %p439_p11 = por %p438_p10, %p437_p9 }
  0xf8   : > { %p435_p8 = pneg %p434_p7 }
  0xf9   : > { %p441_p13 = por %p440_p12, %p439_p11 }
  0xfb   : > { %p442_p0 = pnand %p441_p13, %p435_p8 }
  0xfd   : > { %445 = shalt.err (!%p442_p0)
}
  0xfe   : > { %s486_s7 = smov 128   ;;  %s487_s8 = smov 8  }
  0xff   : > { %374 = dma.vmem_to_hbm [thread:$0]  (%p541_p5), %s575_s21, 384, %s580_s24, %s582_s13, %s486_s7, %s486_s7, %s487_s8  }
 0x100 PF: > { %p380_p1 = scmp.ge.s32.totalorder %s480_s12, 2  ;;  %s275_s14 = sand.u32 1, %s468_s9  }
 0x101   : > { %s276_s16 = scalar_lea.sflag [#allocation3], %s275_s14 }
 0x102   : > { %p377_p2 = pnand %p380_p1, %p545_p6 }
 0x104   : > { %463 = dma.done.wait (!%p377_p2), %s276_s16, 384  }
 0x105   : > { %465 = vsyncadd (!%p377_p2), %s276_s16, 4294966912  ;;  %p12_p3 = scmp.ge.s32.totalorder %s528_s15, 4   ;;  %s628_s9 = smov %s472_s10 }
 0x106   : > { %s629_s10 = smov %s476_s11  ;;  %s630_s11 = smov %s539_s18 }
 0x107   : > { %s631_s12 = smov %s528_s15  ;;  %14 = sbr.rel (!%p12_p3) target bundleno = 3 (0x3), region = 63 }
 0x10e   :  { %281 = vsyncpa [#allocation3], 1 }
 0x10f   :  { %283 = vsyncpa [#allocation3 + $0x1], 1 }

// kernel: tpu_custom_call.1
= control target key start
LH: loop header
LB: loop body
LE: loop exit
PB: predicated region body
PF: predicated region fallthrough
CT: control target
= control target key end

     0   :  { %7 = vsyncpa [#allocation3], 0  ;;  %s623_s0 = inlined_call_operand.vmem [shape: f32[48,40], index: 0, kind: input, shape index: {}]   ;;  %s624_s1 = inlined_call_operand.vmem [shape: f32[40,128], index: 1, kind: input, shape index: {}]   ;;  %s625_s2 = inlined_call_operand.hbm [shape: f32[48,128], index: 2, kind: output, shape index: {}]  }
   0x1   :  { %9 = vsyncpa [#allocation3 + $0x1], 0  ;;  %s503_s9 = smov 0   ;;  %s505_s10 = smov 0  }
   0x2   :  { %s507_s11 = smov 0   ;;  %s509_s12 = smov 0  }
   0x3 LB: > { %s524_s13 = sadd.s32 4294967295, %s480_s12   ;;  %s322_s14 = sadd.s32 4294967294, %s480_s12   ;;  %s480_s12 = sphi %s509_s12, %s631_s12   ;;  %s476_s11 = sphi %s507_s11, %s630_s11   ;;  %s472_s10 = sphi %s505_s10, %s629_s10   ;;  %s468_s9 = sphi %s503_s9, %s628_s9  }
   0x4   : > { %s528_s15 = sadd.s32 1, %s480_s12   ;;  %s69_s16 = sadd.s32 1, %s476_s11 }
   0x5   : > { %s66_s17 = ssub.s32 %s480_s12, %s528_s15  ;;  %p79_p0 = scmp.ne.s32.totalorder %s476_s11, %s472_s10 }
   0x6   : > { %p67_p1 = scmp.eq.s32.totalorder %s66_s17, 0  ;;  %p80_p2 = scmp.eq.s32.totalorder %s524_s13, 1 }
   0x7   : > { %p85_p3 = scmp.ne.s32.totalorder %s472_s10, %s468_s9  ;;  %p86_p4 = scmp.eq.s32.totalorder %s322_s14, 1 }
   0x8   : > { %s539_s18 = scalar_select %p67_p1, %s476_s11, %s69_s16  }
   0x9   : > { %p541_p5 = por %p80_p2, %p79_p0  ;;  %p545_p6 = por %p86_p4, %p85_p3 }
   0xa   : > { %p325_p7 = scmp.ge.s32.totalorder %s480_s12, 1  ;;  %p116_p8 = scmp.lt.s32.totalorder %s480_s12, 3 }
   0xc   : > { %p117_p9 = pnand %p325_p7, %p116_p8 }
   0xd   : > { %v148_v0 = vld [vmem:[%s624_s1] sm:$0xff] (!%p117_p9)  ;;  %v149_v1 = vld [vmem:[%s624_s1 + $0x8] sm:$0xff] (!%p117_p9)  ;;  %v150_v2 = vld [vmem:[%s624_s1 + $0x10] sm:$0xff] (!%p117_p9)  ;;  %v482_v3 = vmov (!%p117_p9), 0.0|0.0   ;;  %s138_s29 = smul.u32 (!%p117_p9), 3, %s524_s13  ;;  %vm483_vm0 = vmmov (!%p117_p9), 0  }
   0xe   : > { %120 = sbr.rel (%p117_p9) target bundleno = 256 (0x100), region = 28  ;;  %367 = vmatprep.subr.bf16.mxu1 (!%p117_p9), %v482_v3  ;;  %v362_v4 = vpack.c.bf16 (!%p117_p9), %v149_v1, %v148_v0  ;;  %361 = vmatprep.subr.bf16.mxu0 (!%p117_p9), %v482_v3  ;;  %v151_v5 = vld [vmem:[%s624_s1 + $0x18] sm:$0xff] (!%p117_p9)  ;;  %v484_v6 = vmov (!%p117_p9), 0.0   ;;  %v152_v8 = vld [vmem:[%s624_s1 + $0x20] sm:$0xff] (!%p117_p9)  ;;  %vm153_vm1 = vcmask (!%p117_p9), 326656   ;;  %s135_s8 = sand.u32 (!%p117_p9), 1, %s472_s10  }
   0xf   : > { %355 = vmatprep.mubr.msk.f32.mxu1 (!%p117_p9), %vm483_vm0, %v484_v6  ;;  %352 = vmatprep.mubr.msk.f32.mxu0 (!%p117_p9), %vm483_vm0, %v484_v6  ;;  %v365_v7 = vpack.c.bf16 (!%p117_p9), %v151_v5, %v150_v2  ;;  %p139_p10 = scmp.lt.s32.totalorder (!%p117_p9), %s138_s29, 5  ;;  %s373_s14 = smul.u32 (!%p117_p9), 24, %s135_s8 }
  0x10   : > { %370 = vmatpush3.bf16.msra.mxu1 (!%p117_p9), %v362_v4  ;;  %363 = vmatpush3.bf16.msra.mxu0 (!%p117_p9), %v362_v4  ;;  %s333_s16 = smul.u32 (!%p117_p9), 384, %s524_s13  ;;  %s582_s13 = scalar_lea.sflag (!%p117_p9), [#allocation3], %s135_s8 }
  0x11   : > { %368 = vmatprep.subr.bf16.mxu1 (!%p117_p9), %v482_v3  ;;  %364 = vmatprep.subr.bf16.mxu0 (!%p117_p9), %v482_v3  ;;  %s137_s17 = scalar_lea.vmem (!%p117_p9), [#allocation2], %s373_s14  ;;  %s485_s26 = smov (!%p117_p9), [#allocation2]  }
  0x12   : > { %s260_s21 = sshll.u32 (!%p117_p9), %s137_s17, 4  ;;  %s580_s24 = scalar_lea.hbm (!%p117_p9), %s625_s2, %s333_s16  ;;  %s575_s21 = int_to_ptr.vmem [resolvable:$true] %s260_s21 }
  0x13   : > { %s418_s25 = scalar_lea.vmem (!%p117_p9), %s575_s21, 384  ;;  %s422_s27 = sshll.u32 (!%p117_p9), %s485_s26, 4  ;;  %s423_s27 = int_to_ptr.vmem [resolvable:$false] %s422_s27 }
  0x14   : > { %371 = vmatpush3.bf16.msra.mxu1 (!%p117_p9), %v365_v7  ;;  %366 = vmatpush3.bf16.msra.mxu0 (!%p117_p9), %v365_v7  ;;  %p419_p11 = scmp.ne.s32.totalorder (!%p117_p9), %s575_s21, %s418_s25  ;;  %s424_s28 = scalar_lea.vmem (!%p117_p9), %s423_s27, 768 }
  0x15   : > { %s633_s29 = smov (!%p139_p10, %s138_s29), 5  ;;  %369 = vmatprep.subr.mxu1 %v484_v6  ;;  %350 = vmatprep.subr.mxu0 %v484_v6  ;;  %p425_p0 = scmp.lt.s32.totalorder %s575_s21, %s423_s27 }
  0x16   : > { %s326_s30 = sshll.u32 %s633_s29, 3  ;;  %p420_p12 = pnand %p419_p11, %p541_p5 }
  0x17   : > { %s142_s7 = scalar_lea.vmem %s623_s0, %s326_s30  ;;  %p426_p1 = scmp.lt.s32.totalorder %s424_s28, %s418_s25 }
  0x18   : > { %v146_v9 = vld [vmem:[%s142_s7 + $0x8] sm:$0xff]  ;;  %v145_v10 = vld [vmem:[%s142_s7] sm:$0xff]  ;;  %372 = vmatpush3.msra.mxu1 %v152_v8  ;;  %351 = vmatpush3.msra.mxu0 %v152_v8  ;;  %v147_v11 = vld [vmem:[%s142_s7 + $0x10] sm:$0xff]  ;;  %p421_p13 = pneg %p420_p12 }
  0x19   : > { %356 = vmatmul.mubr.msk.f32.vlgmr.msra.gmra.mrb[0].mxu1 %vm153_vm1, %v146_v9  ;;  %353 = vmatmul.mubr.msk.f32.vlgmr.msra.gmra.mrb[0].mxu0 %vm153_vm1, %v145_v10  ;;  %p427_p2 = por %p426_p1, %p425_p0 }
  0x1a   : > { %358 = vmatprep.mubr.msk.f32.mxu1 %vm483_vm0, %v484_v6 }
  0x1b   : > { %p428_p3 = pnand %p427_p2, %p421_p13 }
  0x1d   : > { %359 = vmatmul.mubr.msk.f32.gmra.mrb[2].mxu1 %vm153_vm1, %v147_v11 }
  0xec   : > { %v234_v12 = vpop.f32.mrb[0].mxu1  ;;  %v229_v13 = vpop.f32.mrb[0].mxu0 }
  0xed   : > { %244 = vst [vmem:[%s137_s17 + $0x8] sm:$0xff] %v234_v12  ;;  %v357_v14 = vpop.f32.mrb[1].mxu1  ;;  %243 = vst [vmem:[%s137_s17] sm:$0xff] %v229_v13  ;;  %v354_v15 = vpop.f32.mrb[1].mxu0 }
  0xf0   : > { %v239_v16 = vpop.f32.mrb[2].mxu1 }
  0xf1   : > { %245 = vst [vmem:[%s137_s17 + $0x10] sm:$0xff] %v239_v16  ;;  %v360_v17 = vpop.f32.mrb[3].mxu1 }
  0xf2   : > { %431 = shalt.err (!%p428_p3)
}
  0xf3   : > { %s432_s29 = scalar_lea.hbm %s580_s24, 384  ;;  %s436_s4 = scalar_lea.hbm %s625_s2, 768 }
  0xf4   : > { %p433_p4 = scmp.ne.s32.totalorder %s580_s24, %s432_s29  ;;  %p437_p9 = scmp.lt.u32.totalorder %s580_s24, %s625_s2 }
  0xf5   : > { %p438_p10 = scmp.lt.u32.totalorder %s436_s4, %s432_s29  ;;  %p440_p12 = scmp.lt.u32.totalorder %s432_s29, %s580_s24 }
  0xf6   : > { %p434_p7 = pnand %p433_p4, %p541_p5 }
  0xf7   : > { %p439_p11 = por %p438_p10, %p437_p9 }
  0xf8   : > { %p435_p8 = pneg %p434_p7 }
  0xf9   : > { %p441_p13 = por %p440_p12, %p439_p11 }
  0xfb   : > { %p442_p0 = pnand %p441_p13, %p435_p8 }
  0xfd   : > { %445 = shalt.err (!%p442_p0)
}
  0xfe   : > { %s486_s7 = smov 128   ;;  %s487_s8 = smov 8  }
  0xff   : > { %374 = dma.vmem_to_hbm [thread:$0]  (%p541_p5), %s575_s21, 384, %s580_s24, %s582_s13, %s486_s7, %s486_s7, %s487_s8  }
 0x100 PF: > { %p380_p1 = scmp.ge.s32.totalorder %s480_s12, 2  ;;  %s275_s14 = sand.u32 1, %s468_s9  }
 0x101   : > { %s276_s16 = scalar_lea.sflag [#allocation3], %s275_s14 }
 0x102   : > { %p377_p2 = pnand %p380_p1, %p545_p6 }
 0x104   : > { %463 = dma.done.wait (!%p377_p2), %s276_s16, 384  }
 0x105   : > { %465 = vsyncadd (!%p377_p2), %s276_s16, 4294966912  ;;  %p12_p3 = scmp.ge.s32.totalorder %s528_s15, 4   ;;  %s628_s9 = smov %s472_s10 }
 0x106   : > { %s629_s10 = smov %s476_s11  ;;  %s630_s11 = smov %s539_s18 }
 0x107   : > { %s631_s12 = smov %s528_s15  ;;  %14 = sbr.rel (!%p12_p3) target bundleno = 3 (0x3), region = 63 }
 0x10e   :  { %281 = vsyncpa [#allocation3], 1 }
 0x10f   :  { %283 = vsyncpa [#allocation3 + $0x1], 1 }

</bundles_post_ra>
